<compile_context>
chip_gen: v7x
topology: tpu7x:2x2x1
jax: 0.10.0
libtpu: 0.0.40
codegen_flags: <defaults>
</compile_context>

<pallas_src>
import functools

import jax
import jax.numpy as jnp
from jax import lax
from jax.experimental import pallas as pl
from jax.experimental.pallas import tpu as pltpu

LANE = 128


def _channel_attention_kernel(x_ref, w1t_ref, w2t_ref, o_ref, acc_ref, *,
                              bt, hw_tile, hw_true, needs_mask, inv_hw,
                              neg_slope):
    # x_ref:   (Bt, C, HW_TILE)   native dtype, one batch chunk / spatial tile
    # w1t_ref: (C, C_hid) f32     first 1x1 conv weight, transposed (in, out)
    # w2t_ref: (C_hid, C) f32     second 1x1 conv weight, transposed (in, out)
    # o_ref:   (Bt, 1, C) f32     sigmoid channel gates for this batch chunk
    # acc_ref: (2*Bt, C, 128) f32 rows [0:bt] running lane-sums, [bt:2bt] lane-maxes
    hw_idx = pl.program_id(1)
    c = x_ref.shape[1]
    n128 = hw_tile // LANE

    @pl.when(hw_idx == 0)
    def _init():
        acc_ref[0:bt] = jnp.zeros((bt, c, LANE), jnp.float32)
        acc_ref[bt:2 * bt] = jnp.full((bt, c, LANE), -jnp.inf, jnp.float32)

    def load_chunk(k):
        off = pl.multiple_of(k * LANE, LANE)
        return x_ref[:, :, pl.ds(off, LANE)].astype(jnp.float32)

    def mask_for_max(chunk, k):
        # Zero-padded lanes live only past the true HW; send them to -inf so
        # they never win the max.  For fully-valid chunks the where is identity.
        lane_pos = lax.broadcasted_iota(jnp.int32, chunk.shape, 2)
        gpos = hw_idx * hw_tile + k * LANE + lane_pos
        return jnp.where(gpos < hw_true, chunk, -jnp.inf)

    # Per-step local sum/max over 128-lane chunks: pure VPU, layout-preserving,
    # carried in vregs so acc_ref is touched only once per grid step.
    if n128 <= 8:
        c0 = load_chunk(0)
        s = c0
        m = mask_for_max(c0, 0) if (needs_mask and n128 == 1) else c0
        for k in range(1, n128):
            ck = load_chunk(k)
            s = s + ck
            mk = mask_for_max(ck, k) if (needs_mask and k == n128 - 1) else ck
            m = jnp.maximum(m, mk)
    else:
        def body(k, carry):
            s, m = carry
            ck = load_chunk(k)
            mk = mask_for_max(ck, k) if needs_mask else ck
            return s + ck, jnp.maximum(m, mk)

        c0 = load_chunk(0)
        m0 = mask_for_max(c0, 0) if needs_mask else c0
        s, m = lax.fori_loop(1, n128, body, (c0, m0))

    acc_ref[0:bt] = acc_ref[0:bt] + s
    acc_ref[bt:2 * bt] = jnp.maximum(acc_ref[bt:2 * bt], m)

    @pl.when(hw_idx == pl.num_programs(1) - 1)
    def _finalize():
        # Single cross-lane (XLU) reduction per branch, once per batch chunk.
        avg = jnp.sum(acc_ref[0:bt], axis=-1) * inv_hw           # (Bt, C)
        mx = jnp.max(acc_ref[bt:2 * bt], axis=-1)                # (Bt, C)
        pooled = jnp.concatenate([avg, mx], axis=0)              # (2*Bt, C)

        # Fused stacked [avg; max] MLP: two matmuls total.
        h = jnp.dot(pooled, w1t_ref[...],
                    preferred_element_type=jnp.float32)          # (2*Bt, C_hid)
        h = jnp.where(h >= 0, h, neg_slope * h)                  # LeakyReLU(0.3)
        y = jnp.dot(h, w2t_ref[...],
                    preferred_element_type=jnp.float32)          # (2*Bt, C)

        out = y[0:bt] + y[bt:2 * bt]                             # avg + max branch
        # sigmoid = 1 / (1 + exp(-x)); exp on EUP, approx reciprocal on EUP.
        sig = pl.reciprocal(1.0 + jnp.exp(-out), approx=True)
        o_ref[...] = sig.reshape(bt, 1, c)


def _vmem_budgets():
    """Returns (vmem_limit_bytes, per-step x block budget), generation-aware."""
    try:
        cap = pltpu.get_tpu_info().vmem_capacity_bytes
    except Exception:  # unknown toolchain / no info -> conservative defaults
        cap = None
    if cap is not None and cap >= 100 * 1024 * 1024:
        # v5e / v6e: 128 MiB physical VMEM -> bigger blocks, fewer grid steps.
        return 64 * 1024 * 1024, 16 * 1024 * 1024
    # v7x (64 MiB physical, 32 MiB scoped default) or unknown.
    return 32 * 1024 * 1024, 10 * 1024 * 1024


def _choose_tiles(B, C, HW_pad, elem_bytes, budget, *, hw_tile=None, bt=None):
    """Pick (Bt, HW_TILE). HW_TILE is a multiple of 128 dividing HW_pad; the
    double-buffered x block (2 * Bt*C*HW_TILE*elem_bytes) stays under budget."""
    if bt is None:
        # Cap Bt <= B//2 so the 'parallel' batch axis has >=2 iterations
        # (both v7x TensorCores stream x); hw_tile grows to keep bytes/step.
        bt_cap = max(1, B // 2)
        bt = 1
        for d in range(1, bt_cap + 1):
            if B % d == 0 and d * C * LANE * elem_bytes <= budget:
                bt = d
    if hw_tile is None:
        per_chunk = bt * C * LANE * elem_bytes
        max_chunks = max(1, budget // per_chunk)
        total_chunks = HW_pad // LANE
        chunks = 1
        for d in range(1, total_chunks + 1):
            if total_chunks % d == 0 and d <= max_chunks:
                chunks = d
        hw_tile = chunks * LANE
    return bt, hw_tile


def channel_attention(x, w1, w2, *, hw_tile=None, bt=None, negative_slope=0.3):
    """x: (B, C, H, W). w1: (C_hid, C), w2: (C, C_hid) (PyTorch 1x1 conv
    weights with the trailing 1x1 spatial dims squeezed). Returns (B, C, 1, 1)
    float32 sigmoid channel gates."""
    B, C, H, W = x.shape
    HW = H * W
    C_hid = w1.shape[0]

    HW_pad = ((HW + LANE - 1) // LANE) * LANE
    needs_mask = HW_pad != HW

    # Stream x in its native dtype (no wrapper-side f32 upcast). Zero-pad the
    # spatial axis to a lane multiple; sum path is unaffected (inv_hw uses the
    # true HW), max path masks the padded lanes to -inf inside the kernel.
    x_flat = x.reshape(B, C, HW)
    if needs_mask:
        x_flat = jnp.pad(x_flat, ((0, 0), (0, 0), (0, HW_pad - HW)))

    w1t = jnp.transpose(w1).astype(jnp.float32)              # (C, C_hid)
    w2t = jnp.transpose(w2).astype(jnp.float32)              # (C_hid, C)

    vmem_limit, budget = _vmem_budgets()
    elem_bytes = jnp.dtype(x_flat.dtype).itemsize
    bt, hw_tile = _choose_tiles(B, C, HW_pad, elem_bytes, budget,
                                hw_tile=hw_tile, bt=bt)
    assert B % bt == 0, f"Bt={bt} must divide B={B}"
    assert hw_tile % LANE == 0, f"HW_TILE={hw_tile} must be a multiple of {LANE}"
    assert HW_pad % hw_tile == 0, f"HW_TILE={hw_tile} must divide HW_pad={HW_pad}"

    grid = (B // bt, HW_pad // hw_tile)
    kernel = functools.partial(
        _channel_attention_kernel, bt=bt, hw_tile=hw_tile, hw_true=HW,
        needs_mask=needs_mask, inv_hw=1.0 / float(HW),
        neg_slope=float(negative_slope))

    out = pl.pallas_call(
        kernel,
        out_shape=jax.ShapeDtypeStruct((B, 1, C), jnp.float32),
        grid_spec=pltpu.PrefetchScalarGridSpec(
            num_scalar_prefetch=0,
            grid=grid,
            in_specs=[
                pl.BlockSpec((bt, C, hw_tile), lambda b, h: (b, 0, h)),
                pl.BlockSpec((C, C_hid), lambda b, h: (0, 0)),
                pl.BlockSpec((C_hid, C), lambda b, h: (0, 0)),
            ],
            out_specs=pl.BlockSpec((bt, 1, C), lambda b, h: (b, 0, 0)),
            scratch_shapes=[pltpu.VMEM((2 * bt, C, LANE), jnp.float32)],
        ),
        compiler_params=pltpu.CompilerParams(
            # batch axis parallel (megacore on v7x), spatial reduction arbitrary
            dimension_semantics=("parallel", "arbitrary"),
            vmem_limit_bytes=vmem_limit,
        ),
    )(x_flat, w1t, w2t)

    return out.reshape(B, C, 1, 1)


def channel_attention_ref(x, w1, w2, negative_slope=0.3):
    """Pure-JAX reference matching the PyTorch forward."""
    avg = jnp.mean(x, axis=(2, 3))                           # (B, C)
    mx = jnp.max(x, axis=(2, 3))                             # (B, C)

    def fc(v):
        h = v @ w1.T
        h = jnp.where(h >= 0, h, negative_slope * h)
        return h @ w2.T

    out = fc(avg) + fc(mx)
    return jax.nn.sigmoid(out)[:, :, None, None]


if __name__ == "__main__":
    key = jax.random.PRNGKey(0)
    B, C, ratio = 2, 64, 16                 # in_planes=64, ratio=16 -> hidden=4
    C_hid = C // ratio
    k1, k2, kx, kx2, kx3 = jax.random.split(key, 5)

    # PyTorch conv2d 1x1 weights with the 1x1 spatial dims squeezed out.
    w1 = 0.1 * jax.random.normal(k1, (C_hid, C), dtype=jnp.float32)
    w2 = 0.1 * jax.random.normal(k2, (C, C_hid), dtype=jnp.float32)

    # Case 1: 16x16 spatial (HW=256, lane aligned), auto tiling -> grid (2, 1).
    x = jax.random.normal(kx, (B, C, 16, 16), dtype=jnp.float32)
    ref = channel_attention_ref(x, w1, w2)
    out = jax.block_until_ready(channel_attention(x, w1, w2))
    assert out.shape == (B, C, 1, 1)
    assert jnp.allclose(out, ref, atol=5e-3, rtol=5e-3), (
        f"case1 max abs err {jnp.max(jnp.abs(out - ref))}")

    # Case 2: forced hw_tile=128 -> 2 spatial steps per batch chunk, exercising
    # the running sum/max accumulator (init at hw==0, finalize at last step).
    out2 = jax.block_until_ready(channel_attention(x, w1, w2, hw_tile=128))
    assert jnp.allclose(out2, ref, atol=5e-3, rtol=5e-3), (
        f"case2 max abs err {jnp.max(jnp.abs(out2 - ref))}")

    # Case 3: 13x13 spatial (HW=169, not a multiple of 128) -> zero pad + -inf
    # mask for the max path.
    x3 = jax.random.normal(kx2, (B, C, 13, 13), dtype=jnp.float32)
    ref3 = channel_attention_ref(x3, w1, w2)
    out3 = jax.block_until_ready(channel_attention(x3, w1, w2))
    assert jnp.allclose(out3, ref3, atol=5e-3, rtol=5e-3), (
        f"case3 max abs err {jnp.max(jnp.abs(out3 - ref3))}")

    # Case 4: bf16 input streamed natively (no wrapper-side f32 upcast).
    xb = x.astype(jnp.bfloat16)
    ref4 = channel_attention_ref(xb.astype(jnp.float32), w1, w2)
    out4 = jax.block_until_ready(channel_attention(xb, w1, w2))
    assert jnp.allclose(out4, ref4, atol=1e-2, rtol=1e-2), (
        f"case4 max abs err {jnp.max(jnp.abs(out4 - ref4))}")

    # Case 5: 48x48 spatial (HW=2304 -> 18 lane chunks) exercises the rolled
    # fori_loop chunk-accumulation path inside one large tile.
    x5 = jax.random.normal(kx3, (B, C, 48, 48), dtype=jnp.float32)
    ref5 = channel_attention_ref(x5, w1, w2)
    out5 = jax.block_until_ready(channel_attention(x5, w1, w2))
    assert jnp.allclose(out5, ref5, atol=5e-3, rtol=5e-3), (
        f"case5 max abs err {jnp.max(jnp.abs(out5 - ref5))}")

    print("KERNEL_OK")
</pallas_src>

<mosaic_0001>
module attributes {stable_mosaic.version = 11 : i64} {
  func.func @_channel_attention_kernel(%arg0: i32, %arg1: i32, %arg2: memref<1x64x256xf32, #tpu.memory_space<vmem>>, %arg3: memref<64x4xf32, #tpu.memory_space<vmem>>, %arg4: memref<4x64xf32, #tpu.memory_space<vmem>>, %arg5: memref<1x1x64xf32, #tpu.memory_space<vmem>>, %arg6: memref<2x64x128xf32, #tpu.memory_space<vmem>>) attributes {dimension_semantics = [#tpu.dimension_semantics<parallel>, #tpu.dimension_semantics<arbitrary>], iteration_bounds = array<i64: 2, 1>, scalar_prefetch = 0 : i64, scratch_operands = 1 : i64, tpu.core_type = #tpu.core_type<tc>, window_params = [{transform_indices = @transform_0, window_bounds = array<i64: 1, 64, 256>}, {pipeline_mode = #tpu.pipeline_mode<synchronous>, transform_indices = @transform_1, window_bounds = array<i64: 64, 4>}, {pipeline_mode = #tpu.pipeline_mode<synchronous>, transform_indices = @transform_2, window_bounds = array<i64: 4, 64>}, {transform_indices = @transform_3, window_bounds = array<i64: 1, 1, 64>}]} {
    %c0_i32 = arith.constant 0 : i32
    %0 = arith.cmpi eq, %arg1, %c0_i32 : i32
    %1 = arith.extui %0 : i1 to i32
    %c0_i32_0 = arith.constant 0 : i32
    %2 = arith.cmpi ne, %1, %c0_i32_0 : i32
    scf.if %2 {
      %cst = arith.constant 0.000000e+00 : f32
      %20 = vector.broadcast %cst : f32 to vector<1x64x128xf32>
      %c0_18 = arith.constant 0 : index
      %c0_19 = arith.constant 0 : index
      %c0_20 = arith.constant 0 : index
      %21 = vector.load %arg6[%c0_18, %c0_19, %c0_20] : memref<2x64x128xf32, #tpu.memory_space<vmem>>, vector<1x64x128xf32>
      tpu.vector_store %arg6[%c0_18, %c0_19, %c0_20], %20 {strides = array<i32>} : memref<2x64x128xf32, #tpu.memory_space<vmem>>, vector<1x64x128xf32>,
      %cst_21 = arith.constant 0xFF800000 : f32
      %22 = vector.broadcast %cst_21 : f32 to vector<1x64x128xf32>
      %c1_22 = arith.constant 1 : index
      %c0_23 = arith.constant 0 : index
      %c0_24 = arith.constant 0 : index
      %23 = vector.load %arg6[%c1_22, %c0_23, %c0_24] : memref<2x64x128xf32, #tpu.memory_space<vmem>>, vector<1x64x128xf32>
      tpu.vector_store %arg6[%c1_22, %c0_23, %c0_24], %22 {strides = array<i32>} : memref<2x64x128xf32, #tpu.memory_space<vmem>>, vector<1x64x128xf32>,
    } else {
    }
    %c0_i32_1 = arith.constant 0 : i32
    %3 = tpu.assume_multiple %c0_i32_1, 128 : i32
    %c0 = arith.constant 0 : index
    %c0_2 = arith.constant 0 : index
    %4 = arith.index_cast %3 : i32 to index
    %5 = vector.load %arg2[%c0, %c0_2, %4] : memref<1x64x256xf32, #tpu.memory_space<vmem>>, vector<1x64x128xf32>
    %c128_i32 = arith.constant 128 : i32
    %6 = tpu.assume_multiple %c128_i32, 128 : i32
    %c0_3 = arith.constant 0 : index
    %c0_4 = arith.constant 0 : index
    %7 = arith.index_cast %6 : i32 to index
    %8 = vector.load %arg2[%c0_3, %c0_4, %7] : memref<1x64x256xf32, #tpu.memory_space<vmem>>, vector<1x64x128xf32>
    %9 = arith.addf %5, %8 : vector<1x64x128xf32>
    %10 = arith.maximumf %5, %8 : vector<1x64x128xf32>
    %c0_5 = arith.constant 0 : index
    %c0_6 = arith.constant 0 : index
    %c0_7 = arith.constant 0 : index
    %11 = vector.load %arg6[%c0_5, %c0_6, %c0_7] : memref<2x64x128xf32, #tpu.memory_space<vmem>>, vector<1x64x128xf32>
    %12 = arith.addf %11, %9 : vector<1x64x128xf32>
    %c0_8 = arith.constant 0 : index
    %c0_9 = arith.constant 0 : index
    %c0_10 = arith.constant 0 : index
    %13 = vector.load %arg6[%c0_8, %c0_9, %c0_10] : memref<2x64x128xf32, #tpu.memory_space<vmem>>, vector<1x64x128xf32>
    tpu.vector_store %arg6[%c0_8, %c0_9, %c0_10], %12 {strides = array<i32>} : memref<2x64x128xf32, #tpu.memory_space<vmem>>, vector<1x64x128xf32>,
    %c1 = arith.constant 1 : index
    %c0_11 = arith.constant 0 : index
    %c0_12 = arith.constant 0 : index
    %14 = vector.load %arg6[%c1, %c0_11, %c0_12] : memref<2x64x128xf32, #tpu.memory_space<vmem>>, vector<1x64x128xf32>
    %15 = arith.maximumf %14, %10 : vector<1x64x128xf32>
    %c1_13 = arith.constant 1 : index
    %c0_14 = arith.constant 0 : index
    %c0_15 = arith.constant 0 : index
    %16 = vector.load %arg6[%c1_13, %c0_14, %c0_15] : memref<2x64x128xf32, #tpu.memory_space<vmem>>, vector<1x64x128xf32>
    tpu.vector_store %arg6[%c1_13, %c0_14, %c0_15], %15 {strides = array<i32>} : memref<2x64x128xf32, #tpu.memory_space<vmem>>, vector<1x64x128xf32>,
    %c0_i32_16 = arith.constant 0 : i32
    %17 = arith.cmpi eq, %arg1, %c0_i32_16 : i32
    %18 = arith.extui %17 : i1 to i32
    %c0_i32_17 = arith.constant 0 : i32
    %19 = arith.cmpi ne, %18, %c0_i32_17 : i32
    scf.if %19 {
      %c0_18 = arith.constant 0 : index
      %c0_19 = arith.constant 0 : index
      %c0_20 = arith.constant 0 : index
      %20 = vector.load %arg6[%c0_18, %c0_19, %c0_20] : memref<2x64x128xf32, #tpu.memory_space<vmem>>, vector<1x64x128xf32>
      %cst = arith.constant dense<0.000000e+00> : vector<1x64xf32>
      %21 = vector.multi_reduction <add>, %20, %cst [2] : vector<1x64x128xf32> to vector<1x64xf32>
      %cst_21 = arith.constant 3.906250e-03 : f32
      %22 = vector.broadcast %cst_21 : f32 to vector<1x64xf32>
      %23 = arith.mulf %21, %22 : vector<1x64xf32>
      %c1_22 = arith.constant 1 : index
      %c0_23 = arith.constant 0 : index
      %c0_24 = arith.constant 0 : index
      %24 = vector.load %arg6[%c1_22, %c0_23, %c0_24] : memref<2x64x128xf32, #tpu.memory_space<vmem>>, vector<1x64x128xf32>
      %cst_25 = arith.constant dense<0xFF800000> : vector<1x64xf32>
      %25 = vector.multi_reduction <maximumf>, %24, %cst_25 [2] : vector<1x64x128xf32> to vector<1x64xf32>
      %26 = tpu.concatenate %23, %25 in 0 : vector<1x64xf32>, vector<1x64xf32> -> vector<2x64xf32>
      %c0_26 = arith.constant 0 : index
      %c0_27 = arith.constant 0 : index
      %27 = vector.load %arg3[%c0_26, %c0_27] : memref<64x4xf32, #tpu.memory_space<vmem>>, vector<64x4xf32>
      %cst_28 = arith.constant dense<0.000000e+00> : vector<2x4xf32>
      %28 = tpu.matmul %26, %27, %cst_28 {dimension_numbers = #tpu.dot_dimension_numbers<[1], [0], [0], [1], [0, 0, 1, 1], [], []>} : vector<2x64xf32>, vector<64x4xf32>, vector<2x4xf32> -> vector<2x4xf32>
      %cst_29 = arith.constant 0.000000e+00 : f32
      %29 = vector.broadcast %cst_29 : f32 to vector<2x4xf32>
      %30 = arith.cmpf oge, %28, %29 : vector<2x4xf32>
      %cst_30 = arith.constant 3.000000e-01 : f32
      %31 = vector.broadcast %cst_30 : f32 to vector<2x4xf32>
      %32 = arith.mulf %31, %28 : vector<2x4xf32>
      %33 = arith.select %30, %28, %32 : vector<2x4xi1>, vector<2x4xf32>
      %c0_31 = arith.constant 0 : index
      %c0_32 = arith.constant 0 : index
      %34 = vector.load %arg4[%c0_31, %c0_32] : memref<4x64xf32, #tpu.memory_space<vmem>>, vector<4x64xf32>
      %cst_33 = arith.constant dense<0.000000e+00> : vector<2x64xf32>
      %35 = tpu.matmul %33, %34, %cst_33 {dimension_numbers = #tpu.dot_dimension_numbers<[1], [0], [0], [1], [0, 0, 1, 1], [], []>} : vector<2x4xf32>, vector<4x64xf32>, vector<2x64xf32> -> vector<2x64xf32>
      %36 = vector.extract_strided_slice %35 {offsets = [0, 0], sizes = [1, 64], strides = [1, 1]} : vector<2x64xf32> to vector<1x64xf32>
      %37 = vector.extract_strided_slice %35 {offsets = [1, 0], sizes = [1, 64], strides = [1, 1]} : vector<2x64xf32> to vector<1x64xf32>
      %38 = arith.addf %36, %37 : vector<1x64xf32>
      %cst_34 = arith.constant 0.000000e+00 : f32
      %39 = vector.broadcast %cst_34 : f32 to vector<1x64xf32>
      %40 = arith.subf %39, %38 : vector<1x64xf32>
      %41 = math.exp %40 : vector<1x64xf32>
      %cst_35 = arith.constant 1.000000e+00 : f32
      %42 = vector.broadcast %cst_35 : f32 to vector<1x64xf32>
      %43 = arith.addf %42, %41 : vector<1x64xf32>
      %44 = tpu.reciprocal %43 {approx = true} : vector<1x64xf32> -> vector<1x64xf32>
      %45 = vector.shape_cast %44 : vector<1x64xf32> to vector<1x1x64xf32>
      %c0_36 = arith.constant 0 : index
      %c0_37 = arith.constant 0 : index
      %c0_38 = arith.constant 0 : index
      %46 = vector.load %arg5[%c0_36, %c0_37, %c0_38] : memref<1x1x64xf32, #tpu.memory_space<vmem>>, vector<1x1x64xf32>
      tpu.vector_store %arg5[%c0_36, %c0_37, %c0_38], %45 {strides = array<i32>} : memref<1x1x64xf32, #tpu.memory_space<vmem>>, vector<1x1x64xf32>,
    } else {
    }
    return
  }
  func.func @transform_0(%arg0: i32, %arg1: i32) -> (i32, i32, i32) {
    %c0_i32 = arith.constant 0 : i32
    %c0_i32_0 = arith.constant 0 : i32
    return %arg0, %c0_i32, %arg1 : i32, i32, i32
  }
  func.func @transform_1(%arg0: i32, %arg1: i32) -> (i32, i32) {
    %c0_i32 = arith.constant 0 : i32
    %c0_i32_0 = arith.constant 0 : i32
    %c0_i32_1 = arith.constant 0 : i32
    return %c0_i32, %c0_i32_0 : i32, i32
  }
  func.func @transform_2(%arg0: i32, %arg1: i32) -> (i32, i32) {
    %c0_i32 = arith.constant 0 : i32
    %c0_i32_0 = arith.constant 0 : i32
    %c0_i32_1 = arith.constant 0 : i32
    return %c0_i32, %c0_i32_0 : i32, i32
  }
  func.func @transform_3(%arg0: i32, %arg1: i32) -> (i32, i32, i32) {
    %c0_i32 = arith.constant 0 : i32
    %c0_i32_0 = arith.constant 0 : i32
    %c0_i32_1 = arith.constant 0 : i32
    return %arg0, %c0_i32, %c0_i32_0 : i32, i32, i32
  }
}

</mosaic_0001>

<bundles_post_ra>
// kernel: tpu_custom_call.1
= control target key start
LH: loop header
LB: loop body
LE: loop exit
PB: predicated region body
PF: predicated region fallthrough
CT: control target
= control target key end

     0   :  { %8 = vsyncpa [#allocation4], 0  ;;  %s1256_s0 = inlined_call_operand.hbm [shape: f32[2,64,256], index: 0, kind: input, shape index: {}]   ;;  %s1257_s1 = inlined_call_operand.vmem [shape: f32[64,4], index: 1, kind: input, shape index: {}]   ;;  %s1258_s2 = inlined_call_operand.vmem [shape: f32[4,64], index: 2, kind: input, shape index: {}]   ;;  %s1259_s3 = inlined_call_operand.hbm [shape: f32[2,1,64], index: 3, kind: output, shape index: {}]  }
   0x1   :  { %10 = vsyncpa [#allocation4 + $0x1], 0 }
   0x2   :  { %11 = vsyncpa [#allocation5], 0 }
   0x3   :  { %13 = vsyncpa [#allocation5 + $0x1], 0  ;;  %s1029_s12 = smov 0   ;;  %s1031_s13 = smov 0  }
   0x4   :  { %s1033_s14 = smov 0   ;;  %s1035_s15 = smov 0  }
   0x5   :  { %s1037_s16 = smov 0   ;;  %s1039_s17 = smov 0  }
   0x6 LB: > { %s746_s18 = sadd.s32 4294967295, %s1000_s17   ;;  %s747_s19 = sadd.s32 4294967294, %s1000_s17   ;;  %s1000_s17 = sphi %s1039_s17, %s19_s17   ;;  %s996_s16 = sphi %s1037_s16, %s1274_s16   ;;  %s992_s15 = sphi %s1035_s15, %s1273_s15   ;;  %s988_s14 = sphi %s1033_s14, %s1272_s14   ;;  %s984_s13 = sphi %s1031_s13, %s1271_s13   ;;  %s980_s12 = sphi %s1029_s12, %s1270_s12  }
   0x7   : > { %s31_s20 = sadd.s32 1, %s996_s16  ;;  %s40_s21 = sadd.s32 1, %s988_s14 }
   0x8   : > { %p33_p0 = scmp.ge.s32.totalorder %s31_s20, 2  ;;  %p47_p1 = scmp.ne.s32.totalorder %s988_s14, %s984_s13 }
   0x9   : > { %p48_p2 = scmp.eq.s32.totalorder %s1000_s17, 0  ;;  %p53_p3 = scmp.ne.s32.totalorder %s984_s13, %s980_s12 }
   0xa   : > { %s1276_s20 = smov (%p33_p0, %s31_s20), 0  ;;  %p54_p5 = scmp.eq.s32.totalorder %s746_s18, 0 }
   0xb   : > { %p1070_p4 = por %p48_p2, %p47_p1  ;;  %s35_s23 = ssub.s32 %s996_s16, %s1276_s20 }
   0xc   : > { %p119_p6 = scmp.eq.s32.totalorder %s746_s18, 1  ;;  %p38_p7 = scmp.eq.s32.totalorder %s35_s23, 0 }
   0xd   : > { %p1076_p8 = por %p54_p5, %p53_p3  ;;  %p125_p10 = scmp.eq.s32.totalorder %s747_s19, 1 }
   0xe   : > { %p1080_p9 = por %p119_p6, %p47_p1  ;;  %p829_p13 = scmp.lt.s32.totalorder %s1000_s17, 2 }
   0xf   : > { %s1085_s26 = scalar_select %p38_p7, %s988_s14, %s40_s21  }
  0x10   : > { %s1263_s25 = scalar_select %p1080_p9, 1, 0 }
  0x11   : > { %p1087_p11 = por %p125_p10, %p53_p3  ;;  %s151_s28 = sand.u32 1, %s988_s14  }
  0x12   : > { %s750_s29 = sshll.u32 %s151_s28, 7  ;;  %s769_s30 = sshll.u32 %s996_s16, 11 }
  0x13   : > { %s1264_s27 = scalar_select %p1087_p11, 1, 0 }
  0x14   : > { %s1098_s6 = scalar_lea.hbm %s1256_s0, %s769_s30  ;;  %s155_s7 = scalar_lea.vmem [#allocation3], %s750_s29 }
  0x15   : > { %s164_s8 = sshll.u32 %s155_s7, 4  ;;  %p1104_p0 = pnand %p829_p13, %p1070_p4  ;;  %s1100_s8 = int_to_ptr.vmem [resolvable:$true] %s164_s8 }
  0x16   : > { %s1109_s10 = scalar_lea.sflag [#allocation4], %s151_s28  ;;  %s888_s11 = scalar_lea.hbm %s1098_s6, 2048 }
  0x17   : > { %p889_p2 = scmp.ne.s32.totalorder %s1098_s6, %s888_s11  ;;  %p890_p3 = pneg %p1104_p0 }
  0x18   : > { %s893_s21 = scalar_lea.hbm %s1256_s0, 4096  ;;  %p894_p4 = scmp.lt.u32.totalorder %s1098_s6, %s1256_s0 }
  0x19   : > { %p891_p5 = pnand %p890_p3, %p889_p2  ;;  %p895_p7 = scmp.lt.u32.totalorder %s893_s21, %s888_s11 }
  0x1a   : > { %p897_p13 = scmp.lt.u32.totalorder %s888_s11, %s1098_s6 }
  0x1b   : > { %p892_p6 = pneg %p891_p5  ;;  %p896_p10 = por %p895_p7, %p894_p4 }
  0x1d   : > { %p898_p12 = por %p897_p13, %p896_p10 }
  0x1f   : > { %p899_p1 = pnand %p898_p12, %p892_p6 }
  0x21   : > { %902 = shalt.err (!%p899_p1)
}
  0x22   : > { %s903_s28 = scalar_lea.vmem %s1100_s8, 2048  ;;  %s1002_s29 = smov [#allocation3]  }
  0x23   : > { %p904_p2 = scmp.ne.s32.totalorder %s1100_s8, %s903_s28  ;;  %s908_s30 = sshll.u32 %s1002_s29, 4  ;;  %s909_s30 = int_to_ptr.vmem [resolvable:$false] %s908_s30 }
  0x24   : > { %s910_s4 = scalar_lea.vmem %s909_s30, 4096  ;;  %p911_p9 = scmp.lt.s32.totalorder %s1100_s8, %s909_s30 }
  0x25   : > { %p906_p5 = pnand %p904_p2, %p890_p3  ;;  %p912_p4 = scmp.lt.s32.totalorder %s910_s4, %s903_s28 }
  0x27   : > { %p907_p11 = pneg %p906_p5  ;;  %p913_p7 = por %p912_p4, %p911_p9 }
  0x29   : > { %p914_p10 = pnand %p913_p7, %p907_p11 }
  0x2b   : > { %917 = shalt.err (!%p914_p10)
}
  0x2c   : > { %s1003_s5 = smov 256   ;;  %s1004_s7 = smov 16  }
  0x2d   : > { %824 = dma.hbm_to_vmem [thread:$0]  (!%p1104_p0), %s1098_s6, 2048, %s1100_s8, %s1109_s10, %s1003_s5, %s1003_s5, %s1004_s7  }
  0x2e   : > { %p172_p12 = scmp.lt.s32.totalorder %s1000_s17, 3  ;;  %p1266_p1 = scmp.ge.s32.totalorder %s1000_s17, 1 }
  0x30   : > { %p173_p3 = pnand %p1266_p1, %p172_p12 }
  0x31   : > { %s1141_s11 = sand.u32 (!%p173_p3), 1, %s984_s13  }
  0x32   : > { %176 = sbr.rel (%p173_p3) target bundleno = 710 (0x2c6), region = 32  ;;  %s754_s18 = sshll.u32 (!%p173_p3), %s1141_s11, 7 }
  0x33   : > { %s179_s19 = scalar_lea.sflag (!%p173_p3), [#allocation4], %s1141_s11  ;;  %s1145_s21 = scalar_lea.vmem (!%p173_p3), [#allocation3], %s754_s18 }
  0x39   : > { %971 = dma.done.wait (%p1076_p8), %s179_s19, 2048  }
  0x3a   : > { %973 = vsyncadd (%p1076_p8), %s179_s19, 4294965248  ;;  %v228_v0 = vld [vmem:[%s1145_s21 + $0x20] sm:$0xff]  ;;  %v757_v1 = vld [vmem:[%s1145_s21 + $0x28] sm:$0xff]  ;;  %v1005_v35 = vmov 0.0|0.0   ;;  %vm1006_vm0 = vmmov 0   ;;  %v1007_v45 = vmov 0.0   ;;  %v375_v49 = vlaneseq }
  0x3b   : > { %v226_v2 = vld [vmem:[%s1145_s21] sm:$0xff]  ;;  %v245_v3 = vadd.f32 %v757_v1, %v228_v0  ;;  %v755_v4 = vld [vmem:[%s1145_s21 + $0x8] sm:$0xff]  ;;  %v229_v5 = vld [vmem:[%s1145_s21 + $0x30] sm:$0xff]  ;;  %v253_v16 = vmax.f32 %v228_v0, %v757_v1  ;;  %805 = vmatprep.subr.bf16.mxu0 %v1005_v35  ;;  %797 = vmatprep.mubr.msk.f32.mxu0 %vm1006_vm0, %v1007_v45  ;;  %vm386_vm1 = vcmask 130112   ;;  %vm393_vm2 = vcmask 195712   ;;  %s766_s8 = sshll.u32 %s992_s15, 4 }
  0x3c   : > { %v758_v6 = vld [vmem:[%s1145_s21 + $0x38] sm:$0xff]  ;;  %v243_v7 = vadd.f32 %v755_v4, %v226_v2  ;;  %v227_v8 = vld [vmem:[%s1145_s21 + $0x10] sm:$0xff]  ;;  %v251_v13 = vmax.f32 %v226_v2, %v755_v4  ;;  %v230_v14 = vld [vmem:[%s1145_s21 + $0x40] sm:$0xff]  ;;  %800 = vmatprep.subr.mxu1 %v1007_v45  ;;  %802 = vmatprep.mubr.msk.f32.mxu1 %vm1006_vm0, %v1007_v45  ;;  %v376_v52 = vand.u32 127, %v375_v49  ;;  %v378_v56 = vshrl.u32 %v375_v49, 7  ;;  %s203_s9 = scalar_lea.vmem [#allocation6], %s1141_s11  ;;  %s1207_s28 = scalar_lea.hbm %s1259_s3, %s766_s8 }
  0x3d   : > { %v756_v9 = vld [vmem:[%s1145_s21 + $0x18] sm:$0xff]  ;;  %323 = vadd.xlane.f32.xlu1 %v245_v3  ;;  %v246_v10 = vadd.f32 %v758_v6, %v229_v5  ;;  %v759_v15 = vld [vmem:[%s1145_s21 + $0x48] sm:$0xff]  ;;  %v231_v18 = vld [vmem:[%s1145_s21 + $0x50] sm:$0xff]  ;;  %v254_v20 = vmax.f32 %v229_v5, %v758_v6  ;;  %vm400_vm3 = vcmask 261312   ;;  %vm407_vm4 = vcmask 326912   ;;  %s669_s10 = sshll.u32 %s203_s9, 4  ;;  %s1209_s10 = int_to_ptr.vmem [resolvable:$true] %s669_s10 }
  0x3e   : > { %319 = vadd.xlane.f32.xlu0 %v243_v7  ;;  %v244_v11 = vadd.f32 %v756_v9, %v227_v8  ;;  %v252_v12 = vmax.f32 %v227_v8, %v756_v9  ;;  %v247_v17 = vadd.f32 %v759_v15, %v230_v14  ;;  %v760_v19 = vld [vmem:[%s1145_s21 + $0x58] sm:$0xff]  ;;  %v232_v22 = vld [vmem:[%s1145_s21 + $0x60] sm:$0xff]  ;;  %v761_v23 = vld [vmem:[%s1145_s21 + $0x68] sm:$0xff]  ;;  %v255_v24 = vmax.f32 %v230_v14, %v759_v15  ;;  %s657_s29 = scalar_lea.sflag [#allocation5], %s1141_s11  ;;  %s918_s30 = scalar_lea.vmem %s1209_s10, 16 }
  0x3f   : > { %v248_v21 = vadd.f32 %v760_v19, %v231_v18  ;;  %v249_v25 = vadd.f32 %v761_v23, %v232_v22  ;;  %v233_v26 = vld [vmem:[%s1145_s21 + $0x70] sm:$0xff]  ;;  %v762_v27 = vld [vmem:[%s1145_s21 + $0x78] sm:$0xff]  ;;  %v256_v28 = vmax.f32 %v231_v18, %v760_v19  ;;  %v257_v31 = vmax.f32 %v232_v22, %v761_v23  ;;  %v481_v32 = vld [vmem:[%s1257_s1] sm:$0xff]  ;;  %p919_p8 = scmp.ne.s32.totalorder %s1209_s10, %s918_s30  ;;  %p1267_p9 = scmp.ne.s32.totalorder %s1263_s25, 0 }
  0x40   : > { %v250_v29 = vadd.f32 %v762_v27, %v233_v26  ;;  %v258_v30 = vmax.f32 %v233_v26, %v762_v27  ;;  %v482_v33 = vld [vmem:[%s1257_s1 + $0x8] sm:$0xff]  ;;  %v483_v36 = vld [vmem:[%s1257_s1 + $0x10] sm:$0xff]  ;;  %v484_v37 = vld [vmem:[%s1257_s1 + $0x18] sm:$0xff]  ;;  %v381_v54 = vadd.s32 4294967288, %v376_v52  ;;  %v388_v60 = vadd.s32 4294967280, %v376_v52  ;;  %s1008_s15 = smov [#allocation6]  }
  0x41   : > { %325 = vadd.xlane.f32.xlu1 %v246_v10  ;;  %v806_v34 = vpack.c.bf16 %v482_v33, %v481_v32  ;;  %v809_v38 = vpack.c.bf16 %v484_v37, %v483_v36  ;;  %v485_v39 = vld [vmem:[%s1257_s1 + $0x20] sm:$0xff]  ;;  %v486_v40 = vld [vmem:[%s1257_s1 + $0x28] sm:$0xff]  ;;  %v487_v42 = vld [vmem:[%s1257_s1 + $0x30] sm:$0xff]  ;;  %v379_v62 = vsub.s32 %v376_v52, %v378_v56  ;;  %v395_v0 = vadd.s32 4294967272, %v376_v52  ;;  %p920_p11 = pnand %p919_p8, %p1267_p9  ;;  %s922_s4 = sshll.u32 %s1008_s15, 4  ;;  %s923_s4 = int_to_ptr.vmem [resolvable:$false] %s922_s4 }
  0x42   : > { %321 = vadd.xlane.f32.xlu0 %v244_v11  ;;  %v812_v41 = vpack.c.bf16 %v486_v40, %v485_v39  ;;  %v488_v43 = vld [vmem:[%s1257_s1 + $0x38] sm:$0xff]  ;;  %v384_v58 = vsub.s32 %v381_v54, %v378_v56  ;;  %v402_v2 = vadd.s32 4294967264, %v376_v52  ;;  %v409_v3 = vadd.s32 4294967256, %v376_v52  ;;  %s924_s5 = scalar_lea.vmem %s923_s4, 32  ;;  %p925_p6 = scmp.lt.s32.totalorder %s1209_s10, %s923_s4 }
  0x43   : > { %807 = vmatpush3.bf16.msra.mxu0 %v806_v34  ;;  %v815_v44 = vpack.c.bf16 %v488_v43, %v487_v42  ;;  %v391_v5 = vsub.s32 %v388_v60, %v378_v56  ;;  %v416_v8 = vadd.s32 4294967248, %v376_v52  ;;  %v398_v10 = vsub.s32 %v395_v0, %v378_v56  ;;  %p921_p0 = pneg %p920_p11  ;;  %p926_p13 = scmp.lt.s32.totalorder %s924_s5, %s918_s30 }
  0x44   : > { %808 = vmatprep.subr.bf16.mxu0 %v1005_v35  ;;  %v405_v14 = vsub.s32 %v402_v2, %v378_v56  ;;  %vm414_vm5 = vcmask 392512   ;;  %vm421_vm6 = vcmask 458112   ;;  %vm428_vm7 = vcmask 523712  }
  0x45   : > { %353 = vmax.xlane.f32.xlu1 %v252_v12  ;;  %v419_v23 = vsub.s32 %v416_v8, %v378_v56  ;;  %vm479_vm8 = vcmask 1040384   ;;  %vm489_vm9 = vcmask 523264   ;;  %vm571_vm10 = vcmask 1043456   ;;  %p927_p2 = por %p926_p13, %p925_p6 }
  0x46   : > { %351 = vmax.xlane.f32.xlu0 %v251_v13  ;;  %v423_v13 = vadd.s32 4294967240, %v376_v52  ;;  %vm567_vm12 = vcmask 31744   ;;  %vm654_vm13 = vcmask 516096  }
  0x47   : > { %810 = vmatpush3.bf16.msra.mxu0 %v809_v38  ;;  %p928_p5 = pnand %p927_p2, %p921_p0 }
  0x48   : > { %811 = vmatprep.subr.bf16.mxu0 %v1005_v35 }
  0x49   : > { %355 = vmax.xlane.f32.xlu1 %v253_v16  ;;  %v412_v16 = vsub.s32 %v409_v3, %v378_v56 }
  0x4a   : > { %327 = vadd.xlane.f32.xlu0 %v247_v17 }
  0x4b   : > { %813 = vmatpush3.bf16.msra.mxu0 %v812_v41 }
  0x4c   : > { %814 = vmatprep.subr.bf16.mxu0 %v1005_v35 }
  0x4d   : > { %357 = vmax.xlane.f32.xlu1 %v254_v20 }
  0x4e   : > { %329 = vadd.xlane.f32.xlu0 %v248_v21 }
  0x4f   : > { %816 = vmatpush3.bf16.msra.mxu0 %v815_v44 }
  0x51   : > { %359 = vmax.xlane.f32.xlu1 %v255_v24 }
  0x52   : > { %331 = vadd.xlane.f32.xlu0 %v249_v25 }
  0x55   : > { %361 = vmax.xlane.f32.xlu1 %v256_v28  ;;  %v426_v28 = vsub.s32 %v423_v13, %v378_v56 }
  0x56   : > { %333 = vadd.xlane.f32.xlu0 %v250_v29 }
  0x59   : > { %365 = vmax.xlane.f32.xlu1 %v258_v30 }
  0x5a   : > { %363 = vmax.xlane.f32.xlu0 %v257_v31 }
  0xca   : > { %v324_v46 = vpop.xlane.xlu1 %323 }
  0xcb   : > { %v320_v47 = vpop.xlane.xlu0 %319  ;;  %v337_v6 = vmul.f32 0.00390625, %v324_v46 }
  0xcc   : > { %v335_v63 = vmul.f32 0.00390625, %v320_v47 }
  0xcd   : > { %v392_v21 = vrot.slane %v337_v6, %v391_v5 }
  0xce   : > { %v326_v48 = vpop.xlane.xlu1 %325  ;;  %v380_v9 = vrot.slane %v335_v63, %v379_v62 }
  0xcf   : > { %v322_v50 = vpop.xlane.xlu0 %321  ;;  %v338_v11 = vmul.f32 0.00390625, %v326_v48 }
  0xd0   : > { %v336_v59 = vmul.f32 0.00390625, %v322_v50 }
  0xd1   : > { %v399_v26 = vrot.slane %v338_v11, %v398_v10 }
  0xd2   : > { %v354_v51 = vpop.xlane.xlu1 %353  ;;  %v385_v4 = vrot.slane %v336_v59, %v384_v58 }
  0xd3   : > { %v352_v53 = vpop.xlane.xlu0 %351  ;;  %v446_v18 = vrot.slane %v354_v51, %v384_v58 }
  0xd4   : > { %v387_v17 = vsel %vm386_vm1, %v385_v4, %v380_v9  ;;  %v442_v19 = vrot.slane %v352_v53, %v379_v62 }
  0xd5   : > { %v394_v30 = vsel %vm393_vm2, %v392_v21, %v387_v17 }
  0xd6   : > { %v356_v55 = vpop.xlane.xlu1 %355  ;;  %v447_v34 = vsel %vm386_vm1, %v446_v18, %v442_v19  ;;  %v401_v40 = vsel %vm400_vm3, %v399_v26, %v394_v30 }
  0xd7   : > { %v328_v57 = vpop.xlane.xlu0 %327  ;;  %v451_v22 = vrot.slane %v356_v55, %v391_v5  ;;  %v566_v55 = vld [vmem:[%s1258_s2] sm:$0xf] }
  0xd8   : > { %v339_v15 = vmul.f32 0.00390625, %v328_v57  ;;  %801 = vmatpush3.msk.msra.mxu1 %vm571_vm10, %v566_v55 }
  0xd9   : > { %v452_v37 = vsel %vm393_vm2, %v451_v22, %v447_v34 }
  0xda   : > { %v358_v61 = vpop.xlane.xlu1 %357  ;;  %v406_v31 = vrot.slane %v339_v15, %v405_v14 }
  0xdb   : > { %v330_v1 = vpop.xlane.xlu0 %329  ;;  %v456_v27 = vrot.slane %v358_v61, %v398_v10 }
  0xdc   : > { %v340_v20 = vmul.f32 0.00390625, %v330_v1  ;;  %v408_v45 = vsel %vm407_vm4, %v406_v31, %v401_v40 }
  0xdd   : > { %v457_v41 = vsel %vm400_vm3, %v456_v27, %v452_v37 }
  0xde   : > { %v360_v7 = vpop.xlane.xlu1 %359  ;;  %v413_v35 = vrot.slane %v340_v20, %v412_v16 }
  0xdf   : > { %v332_v12 = vpop.xlane.xlu0 %331  ;;  %v461_v32 = vrot.slane %v360_v7, %v405_v14 }
  0xe0   : > { %v341_v24 = vmul.f32 0.00390625, %v332_v12  ;;  %v415_v48 = vsel %vm414_vm5, %v413_v35, %v408_v45 }
  0xe1   : > { %v462_v46 = vsel %vm407_vm4, %v461_v32, %v457_v41 }
  0xe2   : > { %v362_v25 = vpop.xlane.xlu1 %361  ;;  %v420_v38 = vrot.slane %v341_v24, %v419_v23 }
  0xe3   : > { %v334_v29 = vpop.xlane.xlu0 %333  ;;  %v466_v36 = vrot.slane %v362_v25, %v412_v16 }
  0xe4   : > { %v342_v33 = vmul.f32 0.00390625, %v334_v29  ;;  %v422_v50 = vsel %vm421_vm6, %v420_v38, %v415_v48 }
  0xe5   : > { %v467_v49 = vsel %vm414_vm5, %v466_v36, %v462_v46 }
  0xe6   : > { %v366_v39 = vpop.xlane.xlu1 %365  ;;  %v427_v42 = vrot.slane %v342_v33, %v426_v28 }
  0xe7   : > { %v364_v43 = vpop.xlane.xlu0 %363  ;;  %v476_v44 = vrot.slane %v366_v39, %v426_v28 }
  0xe8   : > { %v471_v47 = vrot.slane %v364_v43, %v419_v23  ;;  %v429_v53 = vsel %vm428_vm7, %v427_v42, %v422_v50 }
  0xea   : > { %v472_v51 = vsel %vm421_vm6, %v471_v47, %v467_v49 }
  0xeb   : > { %v477_v52 = vsel %vm428_vm7, %v476_v44, %v472_v51 }
  0xec   : > { %v480_v54 = vsel %vm479_vm8, %v429_v53, %v477_v52 }
  0xed   : > { %798 = vmatmul.mubr.msk.f32.vlgmr.msra.gmra.mrb[0].mxu0 %vm489_vm9, %v480_v54 }
 0x1c0   : > { %v559_v56 = vpop.f32.mrb[0].mxu0 }
 0x1c1   : > { %vm563_vm11 = vcmp.ge.f32.partialorder %v559_v56, 0.0  ;;  %v564_v57 = vmul.f32 0.3, %v559_v56  ;;  %v799_v58 = vpop.f32.mrb[1].mxu0 }
 0x1c3   : > { %v565_v59 = vsel %vm563_vm11, %v559_v56, %v564_v57 }
 0x1c4   : > { %803 = vmatmul.mubr.msk.f32.vlgmr.msra.gmra.mrb[0].mxu1 %vm567_vm12, %v565_v59 }
 0x297   : > { %v641_v60 = vpop.f32.mrb[0].mxu1 }
 0x298   : > { %v646_v61 = vrot.slane %v641_v60, 1  ;;  %v804_v62 = vpop.f32.mrb[1].mxu1 }
 0x29a   : > { %v648_v63 = vadd.f32 %v646_v61, %v641_v60 }
 0x29c   : > { %v649_v0 = vsub.f32 0.0, %v648_v63 }
 0x29e   : > { %v650_v1 = vmul.f32 1.442695, %v649_v0 }
 0x2a0   : > { %884 = vpow2.f32 %v650_v1 }
 0x2aa   : > { %v885_v2 = vpop.eup %884 }
 0x2ab   : > { %v652_v3 = vadd.f32 1.0, %v885_v2 }
 0x2ad   : > { %886 = vrcp.f32 %v652_v3 }
 0x2b7   : > { %v887_v4 = vpop.eup %886 }
 0x2b8   : > { %655 = vst.msk [vmem:[%s203_s9] sm:$0x1] %vm654_vm13, %v887_v4 }
 0x2b9   : > { %931 = shalt.err (!%p928_p5)
}
 0x2ba   : > { %s932_s11 = scalar_lea.hbm %s1207_s28, 16  ;;  %s936_s19 = scalar_lea.hbm %s1259_s3, 32 }
 0x2bb   : > { %p933_p4 = scmp.ne.s32.totalorder %s1207_s28, %s932_s11  ;;  %p937_p12 = scmp.lt.u32.totalorder %s1207_s28, %s1259_s3 }
 0x2bc   : > { %p938_p1 = scmp.lt.u32.totalorder %s936_s19, %s932_s11  ;;  %p940_p8 = scmp.lt.u32.totalorder %s932_s11, %s1207_s28 }
 0x2bd   : > { %p934_p7 = pnand %p933_p4, %p1267_p9 }
 0x2be   : > { %p939_p3 = por %p938_p1, %p937_p12 }
 0x2bf   : > { %p935_p10 = pneg %p934_p7 }
 0x2c0   : > { %p941_p11 = por %p940_p8, %p939_p3 }
 0x2c2   : > { %p942_p0 = pnand %p941_p11, %p935_p10 }
 0x2c4   : > { %945 = shalt.err (!%p942_p0)
}
 0x2c5   : > { %819 = dma.vmem_to_hbm [thread:$0]  (%p1267_p9), %s1209_s10, 16, %s1207_s28, %s657_s29  }
 0x2c6 PF: > { %s681_s6 = sand.u32 1, %s980_s12   ;;  %p1268_p6 = scmp.ne.s32.totalorder %s1264_s27, 0 }
 0x2c7   : > { %p1269_p13 = scmp.ge.s32.totalorder %s1000_s17, 2  ;;  %s682_s8 = scalar_lea.sflag [#allocation5], %s681_s6 }
 0x2c9   : > { %p826_p2 = pnand %p1269_p13, %p1268_p6 }
 0x2cb   : > { %975 = dma.done.wait (!%p826_p2), %s682_s8, 16  }
 0x2cc   : > { %977 = vsyncadd (!%p826_p2), %s682_s8, 4294967280  ;;  %s19_s17 = sadd.s32 1, %s1000_s17   ;;  %s1270_s12 = smov %s984_s13 }
 0x2cd   : > { %p16_p5 = scmp.ge.s32.totalorder %s19_s17, 4   ;;  %s1271_s13 = smov %s988_s14 }
 0x2ce   : > { %s1272_s14 = smov %s1085_s26  ;;  %s1273_s15 = smov %s996_s16 }
 0x2cf   : > { %s1274_s16 = smov %s1276_s20  ;;  %18 = sbr.rel (!%p16_p5) target bundleno = 6 (0x6), region = 88 }
 0x2d6   :  { %686 = vsyncpa [#allocation4], 1 }
 0x2d7   :  { %688 = vsyncpa [#allocation4 + $0x1], 1 }
 0x2d8   :  { %689 = vsyncpa [#allocation5], 1 }
 0x2d9   :  { %691 = vsyncpa [#allocation5 + $0x1], 1 }

</bundles_post_ra>
